<compile_context>
chip_gen: v6e
topology: v6e:2x2x1
jax: 0.10.0
libtpu: 0.0.40
codegen_flags: <defaults>
</compile_context>

<pallas_src>
import numpy as np
import jax
import jax.numpy as jnp
from jax.experimental import pallas as pl
from jax.experimental.pallas import tpu as pltpu


def nis_score_kernel(xt_ref, w1_ref, b1_ref, w2_ref, b2_ref, out_ref):
    # Layer 1: Linear(D, H) + Sigmoid.  (H, D) @ (D, TN) on the MXU -> (H, TN).
    h = jnp.dot(w1_ref[...], xt_ref[...], preferred_element_type=jnp.float32)
    h = 1.0 / (1.0 + jnp.exp(-(h + b1_ref[...])))                 # b1 is (H, 1)

    # Layer 2: Linear(H, 1) + Sigmoid.  Output width 1 -> no MXU matvec:
    # VPU multiply against the (H, 1) weight column + XLU sublane reduce.
    logit = jnp.sum(w2_ref[...] * h, axis=0, keepdims=True) + b2_ref[...]  # (1, TN)
    out_ref[...] = 1.0 / (1.0 + jnp.exp(-logit))                   # lane-dense (1, TN)


def nis_scores(inputs, w1, b1, w2, b2, *, tile_n=256):
    """Fused 2-layer MLP scores: sigmoid(W2 @ sigmoid(W1 @ x^T + b1) + b2).

    inputs: (N, D) f32; w1: (H, D); b1: (H,); w2: (1, H); b2: (1,) or scalar.
    Returns per-row scores of shape (N,) in f32.
    """
    N, D = inputs.shape
    H = w1.shape[0]

    # Put the row axis on lanes so the score output is lane-dense.
    xt = jnp.transpose(inputs).astype(jnp.float32)                 # (D, N)

    if N <= tile_n:
        tn, n_pad = N, N                                           # one full block
    else:
        tn = tile_n                                                # multiple of 128
        n_pad = pl.cdiv(N, tn) * tn
        xt = jnp.pad(xt, ((0, 0), (0, n_pad - N)))                 # padded rows discarded

    w1_f = w1.astype(jnp.float32)                                  # (H, D) torch layout
    b1_c = jnp.reshape(b1, (H, 1)).astype(jnp.float32)             # (H, 1)
    w2_c = jnp.reshape(w2, (H, 1)).astype(jnp.float32)             # (H, 1)
    b2_2 = jnp.reshape(b2, (1, 1)).astype(jnp.float32)             # (1, 1)

    out = pl.pallas_call(
        nis_score_kernel,
        out_shape=jax.ShapeDtypeStruct((1, n_pad), jnp.float32),
        grid=(n_pad // tn,),
        in_specs=[
            pl.BlockSpec((D, tn), lambda i: (0, i)),
            pl.BlockSpec((H, D), lambda i: (0, 0)),
            pl.BlockSpec((H, 1), lambda i: (0, 0)),
            pl.BlockSpec((H, 1), lambda i: (0, 0)),
            pl.BlockSpec((1, 1), lambda i: (0, 0)),
        ],
        out_specs=pl.BlockSpec((1, tn), lambda i: (0, i)),
        compiler_params=pltpu.CompilerParams(dimension_semantics=("parallel",)),
    )(xt, w1_f, b1_c, w2_c, b2_2)

    return out[0, :N]


def nis_forward(inputs, w1, b1, w2, b2):
    """Full NIS forward (eval mode: Dropout = identity).

    Returns (masked_output, scores).  masked_output has a data-dependent number
    of rows, matching torch.masked_select(...).view(-1, D)."""
    scores = nis_scores(inputs, w1, b1, w2, b2)
    # TODO(synk): torch.masked_select has a data-dependent output shape; there
    # is no static-shape Pallas equivalent, so the row gather runs on host.
    scores_np = np.asarray(jax.device_get(scores))
    x_np = np.asarray(jax.device_get(inputs))
    mask = scores_np >= 0.5
    masked = x_np[mask]
    if masked.shape[0] == 0:
        masked = x_np[int(np.argmax(scores_np))][None, :]
    return jnp.asarray(masked), scores


def _reference_scores(inputs, w1, b1, w2, b2):
    h = jax.nn.sigmoid(inputs @ w1.T + b1)
    return jax.nn.sigmoid(h @ w2.T + b2)[:, 0]


if __name__ == "__main__":
    # Small deterministic shapes consistent with NIS(in_channels=16, hidden_dims=[100]).
    N, D, H = 12, 16, 100

    key = jax.random.PRNGKey(0)
    k_x, k_w1, k_b1, k_w2, k_b2 = jax.random.split(key, 5)

    inputs = jax.random.normal(k_x, (N, D), dtype=jnp.float32)

    # Deterministic nn.Linear-style init (uniform +- 1/sqrt(fan_in)).
    bd1 = 1.0 / (D ** 0.5)
    w1 = jax.random.uniform(k_w1, (H, D), minval=-bd1, maxval=bd1, dtype=jnp.float32)
    b1 = jax.random.uniform(k_b1, (H,), minval=-bd1, maxval=bd1, dtype=jnp.float32)
    bd2 = 1.0 / (H ** 0.5)
    w2 = jax.random.uniform(k_w2, (1, H), minval=-bd2, maxval=bd2, dtype=jnp.float32)
    b2 = jax.random.uniform(k_b2, (1,), minval=-bd2, maxval=bd2, dtype=jnp.float32)

    masked_out, scores = nis_forward(inputs, w1, b1, w2, b2)
    masked_out = jax.block_until_ready(masked_out)
    scores = jax.block_until_ready(scores)

    # Pure-JAX / numpy reference of the module forward.
    ref_scores = _reference_scores(inputs, w1, b1, w2, b2)
    assert scores.shape == (N,)
    assert jnp.allclose(scores, ref_scores, atol=1e-5, rtol=1e-5), (scores, ref_scores)

    x_np = np.asarray(inputs)
    ref_mask = np.asarray(ref_scores) >= 0.5
    ref_sel = x_np[ref_mask]
    if ref_sel.shape[0] == 0:
        ref_sel = x_np[int(np.argmax(np.asarray(ref_scores)))][None, :]
    assert masked_out.shape == ref_sel.shape, (masked_out.shape, ref_sel.shape)
    assert np.allclose(np.asarray(masked_out), ref_sel, atol=1e-6)

    print("KERNEL_OK")
</pallas_src>

<mosaic_0001>
module attributes {stable_mosaic.version = 11 : i64} {
  func.func @nis_score_kernel(%arg0: i32, %arg1: memref<16x12xf32, #tpu.memory_space<vmem>>, %arg2: memref<100x16xf32, #tpu.memory_space<vmem>>, %arg3: memref<100x1xf32, #tpu.memory_space<vmem>>, %arg4: memref<100x1xf32, #tpu.memory_space<vmem>>, %arg5: memref<1x1xf32, #tpu.memory_space<vmem>>, %arg6: memref<1x12xf32, #tpu.memory_space<vmem>>) attributes {dimension_semantics = [#tpu.dimension_semantics<parallel>], iteration_bounds = array<i64: 1>, scalar_prefetch = 0 : i64, scratch_operands = 0 : i64, tpu.core_type = #tpu.core_type<tc>, window_params = [{transform_indices = @transform_0, window_bounds = array<i64: 16, 12>}, {pipeline_mode = #tpu.pipeline_mode<synchronous>, transform_indices = @transform_1, window_bounds = array<i64: 100, 16>}, {pipeline_mode = #tpu.pipeline_mode<synchronous>, transform_indices = @transform_2, window_bounds = array<i64: 100, 1>}, {pipeline_mode = #tpu.pipeline_mode<synchronous>, transform_indices = @transform_3, window_bounds = array<i64: 100, 1>}, {pipeline_mode = #tpu.pipeline_mode<synchronous>, transform_indices = @transform_4, window_bounds = array<i64: 1, 1>}, {transform_indices = @transform_5, window_bounds = array<i64: 1, 12>}]} {
    %c0 = arith.constant 0 : index
    %c0_0 = arith.constant 0 : index
    %0 = vector.load %arg2[%c0, %c0_0] : memref<100x16xf32, #tpu.memory_space<vmem>>, vector<100x16xf32>
    %c0_1 = arith.constant 0 : index
    %c0_2 = arith.constant 0 : index
    %1 = vector.load %arg1[%c0_1, %c0_2] : memref<16x12xf32, #tpu.memory_space<vmem>>, vector<16x12xf32>
    %cst = arith.constant dense<0.000000e+00> : vector<100x12xf32>
    %2 = tpu.matmul %0, %1, %cst {dimension_numbers = #tpu.dot_dimension_numbers<[1], [0], [0], [1], [0, 0, 1, 1], [], []>} : vector<100x16xf32>, vector<16x12xf32>, vector<100x12xf32> -> vector<100x12xf32>
    %c0_3 = arith.constant 0 : index
    %c0_4 = arith.constant 0 : index
    %3 = vector.load %arg3[%c0_3, %c0_4] : memref<100x1xf32, #tpu.memory_space<vmem>>, vector<100x1xf32>
    %4 = vector.broadcast %3 : vector<100x1xf32> to vector<100x12xf32>
    %5 = arith.addf %2, %4 : vector<100x12xf32>
    %cst_5 = arith.constant 0.000000e+00 : f32
    %6 = vector.broadcast %cst_5 : f32 to vector<100x12xf32>
    %7 = arith.subf %6, %5 : vector<100x12xf32>
    %8 = math.exp %7 : vector<100x12xf32>
    %cst_6 = arith.constant 1.000000e+00 : f32
    %9 = vector.broadcast %cst_6 : f32 to vector<100x12xf32>
    %10 = arith.addf %9, %8 : vector<100x12xf32>
    %cst_7 = arith.constant 1.000000e+00 : f32
    %11 = vector.broadcast %cst_7 : f32 to vector<100x12xf32>
    %12 = arith.divf %11, %10 : vector<100x12xf32>
    %c0_8 = arith.constant 0 : index
    %c0_9 = arith.constant 0 : index
    %13 = vector.load %arg4[%c0_8, %c0_9] : memref<100x1xf32, #tpu.memory_space<vmem>>, vector<100x1xf32>
    %14 = vector.broadcast %13 : vector<100x1xf32> to vector<100x12xf32>
    %15 = arith.mulf %14, %12 : vector<100x12xf32>
    %cst_10 = arith.constant dense<0.000000e+00> : vector<12xf32>
    %16 = vector.multi_reduction <add>, %15, %cst_10 [0] : vector<100x12xf32> to vector<12xf32>
    %17 = vector.shape_cast %16 : vector<12xf32> to vector<1x12xf32>
    %c0_11 = arith.constant 0 : index
    %c0_12 = arith.constant 0 : index
    %18 = vector.load %arg5[%c0_11, %c0_12] : memref<1x1xf32, #tpu.memory_space<vmem>>, vector<1x1xf32>
    %19 = vector.broadcast %18 : vector<1x1xf32> to vector<1x12xf32>
    %20 = arith.addf %17, %19 : vector<1x12xf32>
    %cst_13 = arith.constant 0.000000e+00 : f32
    %21 = vector.broadcast %cst_13 : f32 to vector<1x12xf32>
    %22 = arith.subf %21, %20 : vector<1x12xf32>
    %23 = math.exp %22 : vector<1x12xf32>
    %cst_14 = arith.constant 1.000000e+00 : f32
    %24 = vector.broadcast %cst_14 : f32 to vector<1x12xf32>
    %25 = arith.addf %24, %23 : vector<1x12xf32>
    %cst_15 = arith.constant 1.000000e+00 : f32
    %26 = vector.broadcast %cst_15 : f32 to vector<1x12xf32>
    %27 = arith.divf %26, %25 : vector<1x12xf32>
    %c0_16 = arith.constant 0 : index
    %c0_17 = arith.constant 0 : index
    %28 = vector.load %arg6[%c0_16, %c0_17] : memref<1x12xf32, #tpu.memory_space<vmem>>, vector<1x12xf32>
    tpu.vector_store %arg6[%c0_16, %c0_17], %27 {strides = array<i32>} : memref<1x12xf32, #tpu.memory_space<vmem>>, vector<1x12xf32>,
    return
  }
  func.func @transform_0(%arg0: i32) -> (i32, i32) {
    %c0_i32 = arith.constant 0 : i32
    %c0_i32_0 = arith.constant 0 : i32
    return %c0_i32, %arg0 : i32, i32
  }
  func.func @transform_1(%arg0: i32) -> (i32, i32) {
    %c0_i32 = arith.constant 0 : i32
    %c0_i32_0 = arith.constant 0 : i32
    %c0_i32_1 = arith.constant 0 : i32
    return %c0_i32, %c0_i32_0 : i32, i32
  }
  func.func @transform_2(%arg0: i32) -> (i32, i32) {
    %c0_i32 = arith.constant 0 : i32
    %c0_i32_0 = arith.constant 0 : i32
    %c0_i32_1 = arith.constant 0 : i32
    return %c0_i32, %c0_i32_0 : i32, i32
  }
  func.func @transform_3(%arg0: i32) -> (i32, i32) {
    %c0_i32 = arith.constant 0 : i32
    %c0_i32_0 = arith.constant 0 : i32
    %c0_i32_1 = arith.constant 0 : i32
    return %c0_i32, %c0_i32_0 : i32, i32
  }
  func.func @transform_4(%arg0: i32) -> (i32, i32) {
    %c0_i32 = arith.constant 0 : i32
    %c0_i32_0 = arith.constant 0 : i32
    %c0_i32_1 = arith.constant 0 : i32
    return %c0_i32, %c0_i32_0 : i32, i32
  }
  func.func @transform_5(%arg0: i32) -> (i32, i32) {
    %c0_i32 = arith.constant 0 : i32
    %c0_i32_0 = arith.constant 0 : i32
    return %c0_i32, %arg0 : i32, i32
  }
}

</mosaic_0001>

<bundles_post_ra>
// kernel: tpu_custom_call.1
= control target key start
LH: loop header
LB: loop body
LE: loop exit
PB: predicated region body
PF: predicated region fallthrough
CT: control target
= control target key end

     0   :  { %s898_s0 = inlined_call_operand.vmem [shape: f32[16,12], index: 0, kind: input, shape index: {}]   ;;  %s899_s1 = inlined_call_operand.vmem [shape: f32[100,16], index: 1, kind: input, shape index: {}]   ;;  %s900_s2 = inlined_call_operand.vmem [shape: f32[100,1], index: 2, kind: input, shape index: {}]   ;;  %s901_s3 = inlined_call_operand.vmem [shape: f32[100,1], index: 3, kind: input, shape index: {}]   ;;  %s902_s4 = inlined_call_operand.<no memory space> [shape: f32[1,1], index: 4, kind: input, shape index: {}]   ;;  %s903_s5 = inlined_call_operand.hbm [shape: f32[1,12], index: 5, kind: output, shape index: {}]  }
   0x1   :  { %v10_v0 = vstv %s902_s4 }
   0x2   :  { %11 = vst [vmem:[#allocation2] sm:$0x1] %v10_v0 }
   0x3   :  { %v37_v1 = vld [vmem:[%s898_s0 + $0x8] sm:$0xff]  ;;  %v680_v2 = vmov 0.0   ;;  %v36_v3 = vld [vmem:[%s898_s0] sm:$0xff]  ;;  %vm116_vm0 = vcmask 130048   ;;  %v30_v5 = vld [vmem:[%s899_s1 + $0x38] sm:$0xff]  ;;  %vm681_vm1 = vmmov 0  }
   0x4   :  { %549 = vmatprep.subr.mxu0 %v680_v2  ;;  %592 = vmatprep.subr.mxu1 %v680_v2  ;;  %v23_v4 = vld [vmem:[%s899_s1] sm:$0xff]  ;;  %v40_v7 = vld [vmem:[%s900_s2 + $0x10] sm:$0xff]  ;;  %v24_v8 = vld [vmem:[%s899_s1 + $0x8] sm:$0xff]  ;;  %v682_v10 = vmov 0  }
   0x5   :  { %550 = vmatpush3.msra.mxu0 %v37_v1  ;;  %594 = vmatpush3.msra.mxu1 %v37_v1  ;;  %v38_v6 = vld [vmem:[%s900_s2] sm:$0xff]  ;;  %v39_v11 = vld [vmem:[%s900_s2 + $0x8] sm:$0xff]  ;;  %v41_v12 = vld [vmem:[%s900_s2 + $0x18] sm:$0xff] }
   0x6   :  { %551 = vmatprep.subr.mxu0 %v680_v2  ;;  %593 = vmatprep.subr.mxu1 %v680_v2  ;;  %v31_v9 = vld [vmem:[%s899_s1 + $0x40] sm:$0xff]  ;;  %v25_v13 = vld [vmem:[%s899_s1 + $0x10] sm:$0xff]  ;;  %v32_v14 = vld [vmem:[%s899_s1 + $0x48] sm:$0xff] }
   0x7   :  { %552 = vmatpush3.msra.mxu0 %v36_v3  ;;  %595 = vmatpush3.msra.mxu1 %v36_v3  ;;  %v42_v15 = vld [vmem:[%s900_s2 + $0x20] sm:$0xff]  ;;  %v43_v16 = vld [vmem:[%s900_s2 + $0x28] sm:$0xff] }
   0x8   :  { %553 = vmatprep.mubr.msk.f32.mxu0 %vm681_vm1, %v680_v2  ;;  %574 = vmatprep.mubr.msk.f32.mxu1 %vm681_vm1, %v680_v2 }
   0x9   :  { %554 = vmatmul.mubr.msk.f32.vlgmr.msra.gmra.mxu0 %vm116_vm0, %v23_v4  ;;  %575 = vmatmul.mubr.msk.f32.vlgmr.msra.gmra.mxu1 %vm116_vm0, %v30_v5 }
   0xa   :  { %556 = vmatprep.mubr.msk.f32.mxu0 %vm681_vm1, %v680_v2  ;;  %577 = vmatprep.mubr.msk.f32.mxu1 %vm681_vm1, %v680_v2 }
   0xb   :  { %600 = vset.pattern.permute.xlu0 %v682_v10  ;;  %601 = vset.pattern.permute.xlu1 %v682_v10 }
   0xc   :  { %53 = vperm.xlu0 %600, %v38_v6   ;;  %63 = vperm.xlu1 %601, %v40_v7  }
   0xd   :  { %557 = vmatmul.mubr.msk.f32.gmra.mxu0 %vm116_vm0, %v24_v8  ;;  %578 = vmatmul.mubr.msk.f32.gmra.mxu1 %vm116_vm0, %v31_v9 }
   0xe   :  { %559 = vmatprep.mubr.msk.f32.mxu0 %vm681_vm1, %v680_v2  ;;  %580 = vmatprep.mubr.msk.f32.mxu1 %vm681_vm1, %v680_v2 }
  0x10   :  { %58 = vperm.xlu0 %600, %v39_v11   ;;  %68 = vperm.xlu1 %601, %v41_v12  }
  0x11   :  { %560 = vmatmul.mubr.msk.f32.gmra.mxu0 %vm116_vm0, %v25_v13  ;;  %581 = vmatmul.mubr.msk.f32.gmra.mxu1 %vm116_vm0, %v32_v14 }
  0x12   :  { %12 = vsyncpa [#allocation4], 0  ;;  %562 = vmatprep.mubr.msk.f32.mxu0 %vm681_vm1, %v680_v2  ;;  %583 = vmatprep.mubr.msk.f32.mxu1 %vm681_vm1, %v680_v2  ;;  %v26_v17 = vld [vmem:[%s899_s1 + $0x18] sm:$0xff]  ;;  %v33_v18 = vld [vmem:[%s899_s1 + $0x50] sm:$0xff]  ;;  %vm455_vm2 = vcmask 97280   ;;  %vm479_vm3 = vcmask 93184  }
  0x13   :  { %v44_v19 = vld [vmem:[%s900_s2 + $0x30] sm:$0xff]  ;;  %v45_v20 = vld [vmem:[%s900_s2 + $0x38] sm:$0xff]  ;;  %v27_v21 = vld [vmem:[%s899_s1 + $0x20] sm:$0xff]  ;;  %vm505_vm4 = vcmask 90112  }
  0x14   :  { %73 = vperm.xlu0 %600, %v42_v15   ;;  %78 = vperm.xlu1 %601, %v43_v16   ;;  %v34_v22 = vld [vmem:[%s899_s1 + $0x58] sm:$0xff]  ;;  %v46_v23 = vld [vmem:[%s900_s2 + $0x40] sm:$0xff]  ;;  %v47_v24 = vld [vmem:[%s900_s2 + $0x48] sm:$0xff] }
  0x15   :  { %563 = vmatmul.mubr.msk.f32.gmra.mxu0 %vm116_vm0, %v26_v17  ;;  %584 = vmatmul.mubr.msk.f32.gmra.mxu1 %vm116_vm0, %v33_v18  ;;  %v28_v25 = vld [vmem:[%s899_s1 + $0x28] sm:$0xff]  ;;  %v35_v26 = vld [vmem:[%s899_s1 + $0x60] sm:$0xf]  ;;  %v48_v27 = vld [vmem:[%s900_s2 + $0x50] sm:$0xff] }
  0x16   :  { %565 = vmatprep.mubr.msk.f32.mxu0 %vm681_vm1, %v680_v2  ;;  %586 = vmatprep.mubr.msk.f32.mxu1 %vm681_vm1, %v680_v2  ;;  %v49_v28 = vld [vmem:[%s900_s2 + $0x58] sm:$0xff]  ;;  %v29_v29 = vld [vmem:[%s899_s1 + $0x30] sm:$0xff]  ;;  %v50_v30 = vld [vmem:[%s900_s2 + $0x60] sm:$0xf] }
  0x17   :  { %v364_v31 = vld [vmem:[%s901_s3] sm:$0xff]  ;;  %v365_v32 = vld [vmem:[%s901_s3 + $0x8] sm:$0xff]  ;;  %v366_v33 = vld [vmem:[%s901_s3 + $0x10] sm:$0xff] }
  0x18   :  { %83 = vperm.xlu0 %600, %v44_v19   ;;  %88 = vperm.xlu1 %601, %v45_v20   ;;  %v367_v34 = vld [vmem:[%s901_s3 + $0x18] sm:$0xff]  ;;  %v368_v35 = vld [vmem:[%s901_s3 + $0x20] sm:$0xff]  ;;  %v369_v36 = vld [vmem:[%s901_s3 + $0x28] sm:$0xff] }
  0x19   :  { %566 = vmatmul.mubr.msk.f32.gmra.mxu0 %vm116_vm0, %v27_v21  ;;  %587 = vmatmul.mubr.msk.f32.gmra.mxu1 %vm116_vm0, %v34_v22  ;;  %v370_v37 = vld [vmem:[%s901_s3 + $0x30] sm:$0xff]  ;;  %v371_v38 = vld [vmem:[%s901_s3 + $0x38] sm:$0xff]  ;;  %v372_v39 = vld [vmem:[%s901_s3 + $0x40] sm:$0xff] }
  0x1a   :  { %568 = vmatprep.mubr.msk.f32.mxu0 %vm681_vm1, %v680_v2  ;;  %589 = vmatprep.mubr.msk.f32.mxu1 %vm681_vm1, %v680_v2  ;;  %v373_v40 = vld [vmem:[%s901_s3 + $0x48] sm:$0xff]  ;;  %v374_v41 = vld [vmem:[%s901_s3 + $0x50] sm:$0xff]  ;;  %v375_v42 = vld [vmem:[%s901_s3 + $0x58] sm:$0xff] }
  0x1b   :  { %v376_v43 = vld [vmem:[%s901_s3 + $0x60] sm:$0xf]  ;;  %s683_s3 = smov [#allocation3]  }
  0x1c   :  { %93 = vperm.xlu0 %600, %v46_v23   ;;  %98 = vperm.xlu1 %601, %v47_v24   ;;  %v488_v44 = vld [vmem:[#allocation2] sm:$0x1]  ;;  %s513_s19 = sshll.u32 %s683_s3, 4  ;;  %s514_s19 = int_to_ptr.vmem [resolvable:$true] %s513_s19 }
  0x1d   :  { %569 = vmatmul.mubr.msk.f32.gmra.mxu0 %vm116_vm0, %v28_v25  ;;  %590 = vmatmul.mubr.msk.f32.gmra.mxu1 %vm116_vm0, %v35_v26  ;;  %s658_s20 = scalar_lea.vmem %s514_s19, 16  ;;  %s662_s21 = scalar_lea.vmem %s514_s19, 32 }
  0x1e   :  { %571 = vmatprep.mubr.msk.f32.mxu0 %vm681_vm1, %v680_v2  ;;  %p659_p0 = scmp.ne.s32.totalorder %s514_s19, %s658_s20  ;;  %p663_p1 = scmp.lt.s32.totalorder %s514_s19, %s514_s19 }
  0x1f   :  { %p664_p2 = scmp.lt.s32.totalorder %s662_s21, %s658_s20 }
  0x20   :  { %103 = vperm.xlu0 %600, %v48_v27   ;;  %108 = vperm.xlu1 %601, %v49_v28  }
  0x21   :  { %572 = vmatmul.mubr.msk.f32.gmra.mxu0 %vm116_vm0, %v29_v29  ;;  %p665_p3 = por %p664_p2, %p663_p1 }
  0x23   :  { %p666_p4 = pnand %p665_p3, %p659_p0 }
  0x24   :  { %113 = vperm.xlu0 %600, %v50_v30   ;;  %379 = vperm.xlu1 %601, %v364_v31  }
  0x28   :  { %384 = vperm.xlu0 %600, %v365_v32   ;;  %389 = vperm.xlu1 %601, %v366_v33  }
  0x2c   :  { %394 = vperm.xlu0 %600, %v367_v34   ;;  %399 = vperm.xlu1 %601, %v368_v35  }
  0x30   :  { %404 = vperm.xlu0 %600, %v369_v36   ;;  %409 = vperm.xlu1 %601, %v370_v37  }
  0x34   :  { %414 = vperm.xlu0 %600, %v371_v38   ;;  %419 = vperm.xlu1 %601, %v372_v39  }
  0x38   :  { %424 = vperm.xlu0 %600, %v373_v40   ;;  %429 = vperm.xlu1 %601, %v374_v41  }
  0x3c   :  { %434 = vperm.xlu0 %600, %v375_v42   ;;  %439 = vperm.xlu1 %601, %v376_v43  }
  0x40   :  { %491 = vperm.xlu0 %600, %v488_v44  }
  0x87   :  { %v54_v45 = vpop.permute.xlu0 %53  ;;  %v64_v46 = vpop.permute.xlu1 %63 }
  0x8b   :  { %v59_v47 = vpop.permute.xlu0 %58  ;;  %v69_v48 = vpop.permute.xlu1 %68 }
  0x8f   :  { %v74_v49 = vpop.permute.xlu0 %73  ;;  %v79_v55 = vpop.permute.xlu1 %78 }
  0x93   :  { %v84_v59 = vpop.permute.xlu0 %83  ;;  %v89_v3 = vpop.permute.xlu1 %88 }
  0x97   :  { %v94_v8 = vpop.permute.xlu0 %93  ;;  %v99_v17 = vpop.permute.xlu1 %98 }
  0x9b   :  { %v104_v23 = vpop.permute.xlu0 %103  ;;  %v109_v35 = vpop.permute.xlu1 %108 }
  0x9f   :  { %v114_v43 = vpop.permute.xlu0 %113 }
  0xc9   :  { %v222_v50 = vpop.f32.mrf.mxu0  ;;  %v257_v51 = vpop.f32.mrf.mxu1 }
  0xca   :  { %v223_v52 = vadd.f32 %v222_v50, %v54_v45  ;;  %v258_v14 = vadd.f32 %v257_v51, %v89_v3  ;;  %v380_v3 = vpop.permute.xlu1 %379 }
  0xcb   :  { %v555_v53 = vpop.f32.mrf.mxu0  ;;  %v576_v54 = vpop.f32.mrf.mxu1 }
  0xcc   :  { %v286_v56 = vsub.f32 0.0, %v223_v52  ;;  %v293_v26 = vsub.f32 0.0, %v258_v14 }
  0xcd   :  { %v227_v57 = vpop.f32.mrf.mxu0  ;;  %v262_v58 = vpop.f32.mrf.mxu1 }
  0xce   :  { %v228_v60 = vadd.f32 %v227_v57, %v59_v47  ;;  %v299_v63 = vmul.f32 1.442695, %v286_v56  ;;  %v263_v18 = vadd.f32 %v262_v58, %v94_v8  ;;  %v313_v38 = vmul.f32 1.442695, %v293_v26  ;;  %v385_v8 = vpop.permute.xlu0 %384 }
  0xcf   :  { %v558_v61 = vpop.f32.mrf.mxu0  ;;  %v579_v62 = vpop.f32.mrf.mxu1 }
  0xd0   :  { %v287_v0 = vsub.f32 0.0, %v228_v60  ;;  %602 = vpow2.f32 %v299_v63  ;;  %v294_v30 = vsub.f32 0.0, %v263_v18 }
  0xd1   :  { %v232_v1 = vpop.f32.mrf.mxu0  ;;  %v267_v2 = vpop.f32.mrf.mxu1 }
  0xd2   :  { %v301_v4 = vmul.f32 1.442695, %v287_v0  ;;  %v233_v5 = vadd.f32 %v232_v1, %v64_v46  ;;  %v268_v20 = vadd.f32 %v267_v2, %v99_v17  ;;  %v315_v44 = vmul.f32 1.442695, %v294_v30 }
  0xd3   :  { %v561_v6 = vpop.f32.mrf.mxu0  ;;  %v582_v7 = vpop.f32.mrf.mxu1 }
  0xd4   :  { %v288_v9 = vsub.f32 0.0, %v233_v5  ;;  %604 = vpow2.f32 %v301_v4  ;;  %v295_v32 = vsub.f32 0.0, %v268_v20 }
  0xd5   :  { %v237_v10 = vpop.f32.mrf.mxu0  ;;  %v272_v11 = vpop.f32.mrf.mxu1 }
  0xd6   :  { %v303_v12 = vmul.f32 1.442695, %v288_v9  ;;  %v238_v13 = vadd.f32 %v237_v10, %v69_v48  ;;  %v273_v27 = vadd.f32 %v272_v11, %v104_v23  ;;  %v317_v47 = vmul.f32 1.442695, %v295_v32  ;;  %v390_v11 = vpop.permute.xlu1 %389 }
  0xd7   :  { %v564_v15 = vpop.f32.mrf.mxu0  ;;  %v585_v16 = vpop.f32.mrf.mxu1 }
  0xd8   :  { %606 = vpow2.f32 %v303_v12  ;;  %v289_v19 = vsub.f32 0.0, %v238_v13  ;;  %v296_v39 = vsub.f32 0.0, %v273_v27 }
  0xd9   :  { %v242_v21 = vpop.f32.mrf.mxu0  ;;  %v277_v22 = vpop.f32.mrf.mxu1 }
  0xda   :  { %v305_v24 = vmul.f32 1.442695, %v289_v19  ;;  %v243_v25 = vadd.f32 %v242_v21, %v74_v49  ;;  %v278_v40 = vadd.f32 %v277_v22, %v109_v35  ;;  %v319_v53 = vmul.f32 1.442695, %v296_v39  ;;  %v395_v19 = vpop.permute.xlu0 %394 }
  0xdb   :  { %v567_v28 = vpop.f32.mrf.mxu0  ;;  %v588_v29 = vpop.f32.mrf.mxu1 }
  0xdc   :  { %608 = vpow2.f32 %v305_v24  ;;  %v290_v31 = vsub.f32 0.0, %v243_v25  ;;  %v297_v54 = vsub.f32 0.0, %v278_v40  ;;  %v400_v24 = vpop.permute.xlu1 %399 }
  0xdd   :  { %v247_v33 = vpop.f32.mrf.mxu0  ;;  %v282_v34 = vpop.f32.mrf.mxu1 }
  0xde   :  { %v307_v36 = vmul.f32 1.442695, %v290_v31  ;;  %v248_v37 = vadd.f32 %v247_v33, %v79_v55  ;;  %v603_v46 = vpop.eup %602  ;;  %v283_v48 = vadd.f32 %v282_v34, %v114_v43  ;;  %v321_v63 = vmul.f32 1.442695, %v297_v54  ;;  %v405_v32 = vpop.permute.xlu0 %404 }
  0xdf   :  { %v570_v41 = vpop.f32.mrf.mxu0  ;;  %v591_v42 = vpop.f32.mrf.mxu1  ;;  %v325_v56 = vadd.f32 1.0, %v603_v46 }
  0xe0   :  { %v291_v45 = vsub.f32 0.0, %v248_v37  ;;  %610 = vpow2.f32 %v307_v36  ;;  %v298_v61 = vsub.f32 0.0, %v283_v48  ;;  %v410_v37 = vpop.permute.xlu1 %409 }
  0xe1   :  { %v252_v49 = vpop.f32.mrf.mxu0  ;;  %v605_v50 = vpop.eup %604  ;;  %612 = vpow2.f32 %v313_v38 }
  0xe2   :  { %v309_v51 = vmul.f32 1.442695, %v291_v45  ;;  %v253_v52 = vadd.f32 %v252_v49, %v84_v59  ;;  %614 = vpow2.f32 %v315_v44  ;;  %v326_v60 = vadd.f32 1.0, %v605_v50  ;;  %v415_v44 = vpop.permute.xlu0 %414 }
  0xe3   :  { %v573_v55 = vpop.f32.mrf.mxu0  ;;  %616 = vpow2.f32 %v317_v47  ;;  %v323_v59 = vmul.f32 1.442695, %v298_v61 }
  0xe4   :  { %v292_v57 = vsub.f32 0.0, %v253_v52  ;;  %618 = vpow2.f32 %v309_v51  ;;  %v420_v49 = vpop.permute.xlu1 %419 }
  0xe5   :  { %v607_v58 = vpop.eup %606  ;;  %620 = vpow2.f32 %v319_v53 }
  0xe6   :  { %v311_v62 = vmul.f32 1.442695, %v292_v57  ;;  %622 = vrcp.f32 %v325_v56  ;;  %v327_v0 = vadd.f32 1.0, %v607_v58  ;;  %v425_v58 = vpop.permute.xlu0 %424 }
  0xe7   :  { %624 = vrcp.f32 %v326_v60 }
  0xe8   :  { %626 = vpow2.f32 %v311_v62 }
  0xe9   :  { %v609_v1 = vpop.eup %608  ;;  %628 = vpow2.f32 %v321_v63 }
  0xea   :  { %v328_v2 = vadd.f32 1.0, %v609_v1  ;;  %630 = vrcp.f32 %v327_v0  ;;  %v430_v0 = vpop.permute.xlu1 %429 }
  0xeb   :  { %632 = vpow2.f32 %v323_v59 }
  0xec   :  { %634 = vrcp.f32 %v328_v2 }
  0xed   :  { %v611_v4 = vpop.eup %610 }
  0xee   :  { %v613_v5 = vpop.eup %612  ;;  %v329_v6 = vadd.f32 1.0, %v611_v4 }
  0xef   :  { %v615_v7 = vpop.eup %614  ;;  %v332_v13 = vadd.f32 1.0, %v613_v5 }
  0xf0   :  { %v617_v9 = vpop.eup %616  ;;  %636 = vrcp.f32 %v329_v6  ;;  %v333_v16 = vadd.f32 1.0, %v615_v7 }
  0xf1   :  { %v619_v10 = vpop.eup %618  ;;  %v334_v21 = vadd.f32 1.0, %v617_v9 }
  0xf2   :  { %v621_v12 = vpop.eup %620  ;;  %v330_v14 = vadd.f32 1.0, %v619_v10 }
  0xf3   :  { %v623_v15 = vpop.eup %622  ;;  %v335_v27 = vadd.f32 1.0, %v621_v12  ;;  %v440_v12 = vpop.permute.xlu1 %439 }
  0xf4   :  { %v625_v17 = vpop.eup %624  ;;  %638 = vrcp.f32 %v330_v14  ;;  %v442_v29 = vmul.f32 %v623_v15, %v380_v3 }
  0xf5   :  { %v627_v18 = vpop.eup %626  ;;  %640 = vrcp.f32 %v332_v13  ;;  %v443_v26 = vmul.f32 %v625_v17, %v385_v8  ;;  %v435_v8 = vpop.permute.xlu0 %434 }
  0xf6   :  { %v629_v20 = vpop.eup %628  ;;  %v331_v22 = vadd.f32 1.0, %v627_v18  ;;  %642 = vrcp.f32 %v333_v16  ;;  %v456_v38 = vsel %vm455_vm2, %v442_v29, 0.0 }
  0xf7   :  { %v631_v23 = vpop.eup %630  ;;  %v336_v31 = vadd.f32 1.0, %v629_v20  ;;  %v457_v33 = vsel %vm455_vm2, %v443_v26, 0.0  ;;  %v494_v20 = vlaneseq }
  0xf8   :  { %v633_v25 = vpop.eup %632  ;;  %644 = vrcp.f32 %v331_v22  ;;  %v444_v30 = vmul.f32 %v631_v23, %v390_v11  ;;  %v458_v41 = vadd.f32 %v457_v33, %v456_v38 }
  0xf9   :  { %v635_v28 = vpop.eup %634  ;;  %646 = vrcp.f32 %v334_v21  ;;  %v337_v35 = vadd.f32 1.0, %v633_v25  ;;  %v495_v23 = vshrl.u32 %v494_v20, 7 }
  0xfa   :  { %v445_v34 = vmul.f32 %v635_v28, %v395_v19  ;;  %648 = vrcp.f32 %v335_v27  ;;  %v459_v39 = vsel %vm455_vm2, %v444_v30, 0.0  ;;  %v492_v28 = vpop.permute.xlu0 %491 }
  0xfb   :  { %650 = vrcp.f32 %v336_v31  ;;  %v460_v45 = vadd.f32 %v459_v39, %v458_v41  ;;  %v496_v26 = vsub.s32 0, %v495_v23 }
  0xfc   :  { %v461_v42 = vsel %vm455_vm2, %v445_v34, 0.0  ;;  %652 = vrcp.f32 %v337_v35 }
  0xfd   :  { %v637_v36 = vpop.eup %636  ;;  %v462_v50 = vadd.f32 %v461_v42, %v460_v45  ;;  %v497_v30 = vrot.slane %v492_v28, %v496_v26 }
  0xfe   :  { %v446_v40 = vmul.f32 %v637_v36, %v400_v24 }
 0x100   :  { %v463_v46 = vsel %vm455_vm2, %v446_v40, 0.0 }
 0x101   :  { %v639_v43 = vpop.eup %638  ;;  %v464_v54 = vadd.f32 %v463_v46, %v462_v50 }
 0x102   :  { %v447_v47 = vmul.f32 %v639_v43, %v405_v32  ;;  %v641_v48 = vpop.eup %640 }
 0x103   :  { %v643_v51 = vpop.eup %642  ;;  %v449_v55 = vmul.f32 %v641_v48, %v415_v44 }
 0x104   :  { %v465_v52 = vsel %vm455_vm2, %v447_v47, 0.0  ;;  %v450_v61 = vmul.f32 %v643_v51, %v420_v49 }
 0x105   :  { %v645_v53 = vpop.eup %644  ;;  %v466_v60 = vadd.f32 %v465_v52, %v464_v54  ;;  %v469_v59 = vsel %vm455_vm2, %v449_v55, 0.0 }
 0x106   :  { %v448_v56 = vmul.f32 %v645_v53, %v410_v37  ;;  %v647_v57 = vpop.eup %646  ;;  %v471_v5 = vsel %vm455_vm2, %v450_v61, 0.0 }
 0x107   :  { %v649_v63 = vpop.eup %648  ;;  %v451_v2 = vmul.f32 %v647_v57, %v425_v58 }
 0x108   :  { %v467_v62 = vsel %vm455_vm2, %v448_v56, 0.0  ;;  %v651_v3 = vpop.eup %650  ;;  %v452_v6 = vmul.f32 %v649_v63, %v430_v0 }
 0x109   :  { %v468_v1 = vadd.f32 %v467_v62, %v466_v60  ;;  %v653_v7 = vpop.eup %652  ;;  %v473_v10 = vsel %vm455_vm2, %v451_v2, 0.0  ;;  %v453_v11 = vmul.f32 %v651_v3, %v435_v8 }
 0x10a   :  { %v475_v14 = vsel %vm455_vm2, %v452_v6, 0.0  ;;  %v454_v15 = vmul.f32 %v653_v7, %v440_v12 }
 0x10b   :  { %v470_v4 = vadd.f32 %v469_v59, %v468_v1  ;;  %v477_v17 = vsel %vm455_vm2, %v453_v11, 0.0 }
 0x10c   :  { %v480_v19 = vsel %vm479_vm3, %v454_v15, 0.0 }
 0x10d   :  { %v472_v9 = vadd.f32 %v471_v5, %v470_v4 }
 0x10f   :  { %v474_v13 = vadd.f32 %v473_v10, %v472_v9 }
 0x111   :  { %v476_v16 = vadd.f32 %v475_v14, %v474_v13 }
 0x113   :  { %v478_v18 = vadd.f32 %v477_v17, %v476_v16 }
 0x115   :  { %v481_v21 = vadd.f32 %v480_v19, %v478_v18 }
 0x117   :  { %v482_v22 = vrot.slane %v481_v21, 4 }
 0x119   :  { %v483_v24 = vadd.f32 %v482_v22, %v481_v21 }
 0x11b   :  { %v484_v25 = vrot.slane %v483_v24, 2 }
 0x11d   :  { %v485_v27 = vadd.f32 %v484_v25, %v483_v24 }
 0x11f   :  { %v486_v29 = vrot.slane %v485_v27, 1 }
 0x121   :  { %v487_v31 = vadd.f32 %v486_v29, %v485_v27 }
 0x123   :  { %v498_v32 = vadd.f32 %v497_v30, %v487_v31 }
 0x125   :  { %v499_v33 = vsub.f32 0.0, %v498_v32 }
 0x127   :  { %v500_v34 = vmul.f32 1.442695, %v499_v33 }
 0x129   :  { %654 = vpow2.f32 %v500_v34 }
 0x136   :  { %v655_v35 = vpop.eup %654 }
 0x137   :  { %v502_v36 = vadd.f32 1.0, %v655_v35 }
 0x139   :  { %656 = vrcp.f32 %v502_v36 }
 0x146   :  { %v657_v37 = vpop.eup %656 }
 0x147   :  { %506 = vst.msk [vmem:[#allocation3] sm:$0x1] %vm505_vm4, %v657_v37 }
 0x148   :  { %669 = shalt.err (!%p666_p4)
}
 0x149   :  { %516 = dma.vmem_to_hbm [thread:$0]  %s514_s19, 16, %s903_s5, [#allocation4]  }
 0x14a   :  { %678 = dma.done.wait [#allocation4], 16  }
 0x14b   :  { %679 = vsyncadd [#allocation4], 4294967280 }
 0x14c   :  { %520 = vsyncpa [#allocation4], 1 }

</bundles_post_ra>
